<compile_context>
chip_gen: v5e
topology: v5e:2x2
jax: 0.10.0
libtpu: 0.0.40
codegen_flags: <defaults>
</compile_context>

<pallas_src>
import jax
import jax.numpy as jnp
from jax.experimental import pallas as pl
from jax.experimental.pallas import tpu as pltpu

DIM = 3          # Mlp2 in/out features
HIDDEN = 7       # Mlp2 hidden features
N_BLOCKS = 4     # mlp2, mlp2_1, mlp2_2, mlp2_3

BLOCK_ROWS = 8   # slab rows per Mlp2 block (padded to the sublane count)
SLAB_LANES = 128 # slab lane width (one vreg row)


def sorting_kernel(w_ref, x_ref, o_ref):
    """w_ref: (N_BLOCKS*8, 128) packed params.

    x_ref: (TILE, DIM) row-major input tile.
    o_ref: (8, TILE) lane-dense output tile (features on sublanes).
    """
    x = x_ref[...].astype(jnp.float32)                        # (TILE, 3)

    # --- block 0 fc1: row-major matmul (no transpose of the narrow input),
    # then one aligned (TILE,8)->(8,TILE) transpose, THEN bias+ReLU lane-dense.
    w1t = w_ref[0:DIM, 32:40]                                  # (3, 8) fc1_0.weight.T (padded)
    b1c = w_ref[0:BLOCK_ROWS, 8:9]                             # (8, 1) fc1_0.bias column (padded)
    h = jnp.dot(x, w1t, preferred_element_type=jnp.float32).T  # (8, TILE) lane-dense
    h = jnp.maximum(h + b1c, 0.0)

    # --- fused (fc2_{i-1} ∘ fc1_i) layers, all lane-dense W @ h on the MXU.
    for i in range(1, N_BLOCKS):
        r = i * BLOCK_ROWS
        wf = w_ref[r:r + BLOCK_ROWS, 0:8]                      # (8, 8) fused weight (padded)
        bf = w_ref[r:r + BLOCK_ROWS, 8:9]                      # (8, 1) fused bias column
        h = jnp.maximum(
            jnp.dot(wf, h, preferred_element_type=jnp.float32) + bf, 0.0)

    # --- final fc2 of the last block; padded rows 3..7 stay exactly zero.
    r = (N_BLOCKS - 1) * BLOCK_ROWS
    w2 = w_ref[r:r + BLOCK_ROWS, 16:24]                        # (8, 8) padded fc2_3.weight
    b2 = w_ref[r:r + BLOCK_ROWS, 24:25]                        # (8, 1) fc2_3.bias column
    out = jnp.dot(w2, h, preferred_element_type=jnp.float32) + b2
    o_ref[...] = out.astype(o_ref.dtype)                       # full-vreg lane-dense store


def _round_up(v, m):
    return (v + m - 1) // m * m


def init_params(key):
    """Deterministic synthetic parameters matching the PyTorch module shapes."""
    params = []
    for _ in range(N_BLOCKS):
        k1, k2, k3, k4, key = jax.random.split(key, 5)
        w1 = jax.random.normal(k1, (HIDDEN, DIM), jnp.float32) * 0.1
        b1 = jax.random.normal(k2, (1, HIDDEN), jnp.float32) * 0.1
        w2 = jax.random.normal(k3, (DIM, HIDDEN), jnp.float32) * 0.1
        b2 = jax.random.normal(k4, (1, DIM), jnp.float32) * 0.1
        params += [w1, b1, w2, b2]
    return params


def pack_params(params):
    """Pack (and fuse) all Mlp2 parameters into one zero-padded f32 slab.

    Fusion: there is no nonlinearity between fc2_i and fc1_{i+1}, so
      W_fused_i = W1_{i+1} @ W2_i          (7x7)
      b_fused_i = W1_{i+1} @ b2_i + b1_{i+1}
    """
    slab = jnp.zeros((N_BLOCKS * BLOCK_ROWS, SLAB_LANES), jnp.float32)

    # Block 0: row-major fc1 form (x @ W1.T) + lane-dense bias column.
    w1_0, b1_0 = params[0], params[1]
    slab = slab.at[0:DIM, 32:32 + HIDDEN].set(w1_0.T)                      # (3, 7)
    slab = slab.at[0:HIDDEN, 8:9].set(b1_0.reshape(HIDDEN, 1))             # (7, 1)

    # Blocks 1..3: fused (fc2_{i-1} ∘ fc1_i) weight/bias in lane-dense form.
    for i in range(1, N_BLOCKS):
        w1_i, b1_i = params[4 * i], params[4 * i + 1]
        w2_p, b2_p = params[4 * (i - 1) + 2], params[4 * (i - 1) + 3]
        wf = w1_i @ w2_p                                                   # (7, 7)
        bf = w1_i @ b2_p.reshape(DIM, 1) + b1_i.reshape(HIDDEN, 1)         # (7, 1)
        r = i * BLOCK_ROWS
        slab = slab.at[r:r + HIDDEN, 0:HIDDEN].set(wf)
        slab = slab.at[r:r + HIDDEN, 8:9].set(bf)

    # Final fc2 of the last block (lane-dense W @ h form).
    w2_l, b2_l = params[4 * (N_BLOCKS - 1) + 2], params[4 * (N_BLOCKS - 1) + 3]
    r = (N_BLOCKS - 1) * BLOCK_ROWS
    slab = slab.at[r:r + DIM, 16:16 + HIDDEN].set(w2_l)                    # (3, 7)
    slab = slab.at[r:r + DIM, 24:25].set(b2_l.reshape(DIM, 1))             # (3, 1)
    return slab


def _choose_tile(n, max_tile_rows):
    n128 = _round_up(max(n, 1), 128)
    tile = min(max_tile_rows, n128)
    # Prefer >= 2 tiles when there is enough work so both v7x TensorCores
    # (dimension_semantics=("parallel",)) get a share of the grid.
    if tile == n128 and n128 >= 2 * 128:
        tile = _round_up(n128 // 2, 128)
    return tile


def sorting_model(x, params, *, max_tile_rows=8192):
    """x: [N, DIM] -> [N, DIM]; params: list as produced by init_params()."""
    n = x.shape[0]
    slab = pack_params(params)

    max_tile_rows = _round_up(max_tile_rows, 128)
    tile = _choose_tile(n, max_tile_rows)
    n_pad = _round_up(max(n, 1), tile)
    x_pad = jnp.pad(x, ((0, n_pad - n), (0, 0))) if n_pad != n else x

    # Output is produced feature-major / lane-dense: (8, n_pad).
    out_fm = pl.pallas_call(
        sorting_kernel,
        out_shape=jax.ShapeDtypeStruct((BLOCK_ROWS, n_pad), x.dtype),
        grid=(n_pad // tile,),
        in_specs=[
            pl.BlockSpec(slab.shape, lambda i: (0, 0)),        # params stay resident
            pl.BlockSpec((tile, DIM), lambda i: (i, 0)),       # row-major input tile
        ],
        out_specs=pl.BlockSpec((BLOCK_ROWS, tile), lambda i: (0, i)),
        compiler_params=pltpu.CompilerParams(
            dimension_semantics=("parallel",),                 # megacore split on v7x
        ),
    )(slab, x_pad)

    # Recover the module's [N, 3] contract with one wrapper-side transpose.
    return out_fm[:DIM, :n].T


def sorting_model_ref(x, params):
    """Pure-JAX reference (unfused) for correctness checking."""
    h = x.astype(jnp.float32)
    for i in range(N_BLOCKS):
        w1, b1, w2, b2 = params[4 * i: 4 * i + 4]
        h = jnp.maximum(h @ w1.T + b1, 0.0)
        h = h @ w2.T + b2
    return h.astype(x.dtype)


if __name__ == "__main__":
    key = jax.random.PRNGKey(0)
    kx, kp = jax.random.split(key)
    params = init_params(kp)

    # Small primary case (matches the PyTorch demo batch).
    batch = 8
    x = jax.random.normal(kx, (batch, DIM), jnp.float32)
    out = jax.block_until_ready(sorting_model(x, params))
    ref = sorting_model_ref(x, params)
    assert out.shape == (batch, DIM)
    assert jnp.allclose(out, ref, atol=1e-5, rtol=1e-5), (out, ref)

    # Second case exercising padding + the multi-tile "parallel" grid path.
    x2 = jax.random.normal(kx, (3000, DIM), jnp.float32)
    out2 = jax.block_until_ready(sorting_model(x2, params, max_tile_rows=1024))
    ref2 = sorting_model_ref(x2, params)
    assert out2.shape == (3000, DIM)
    assert jnp.allclose(out2, ref2, atol=1e-5, rtol=1e-5)

    print("KERNEL_OK")
</pallas_src>

<mosaic_0001>
module attributes {stable_mosaic.version = 11 : i64} {
  func.func @sorting_kernel(%arg0: i32, %arg1: memref<32x128xf32, #tpu.memory_space<vmem>>, %arg2: memref<128x3xf32, #tpu.memory_space<vmem>>, %arg3: memref<8x128xf32, #tpu.memory_space<vmem>>) attributes {dimension_semantics = [#tpu.dimension_semantics<parallel>], iteration_bounds = array<i64: 1>, scalar_prefetch = 0 : i64, scratch_operands = 0 : i64, tpu.core_type = #tpu.core_type<tc>, window_params = [{pipeline_mode = #tpu.pipeline_mode<synchronous>, transform_indices = @transform_0, window_bounds = array<i64: 32, 128>}, {transform_indices = @transform_1, window_bounds = array<i64: 128, 3>}, {transform_indices = @transform_2, window_bounds = array<i64: 8, 128>}]} {
    %c0 = arith.constant 0 : index
    %c0_0 = arith.constant 0 : index
    %0 = vector.load %arg2[%c0, %c0_0] : memref<128x3xf32, #tpu.memory_space<vmem>>, vector<128x3xf32>
    %c0_1 = arith.constant 0 : index
    %c32 = arith.constant 32 : index
    %1 = vector.load %arg1[%c0_1, %c32] : memref<32x128xf32, #tpu.memory_space<vmem>>, vector<3x8xf32>
    %c0_2 = arith.constant 0 : index
    %c8 = arith.constant 8 : index
    %2 = vector.load %arg1[%c0_2, %c8] : memref<32x128xf32, #tpu.memory_space<vmem>>, vector<8x1xf32>
    %cst = arith.constant dense<0.000000e+00> : vector<128x8xf32>
    %3 = tpu.matmul %0, %1, %cst {dimension_numbers = #tpu.dot_dimension_numbers<[1], [0], [0], [1], [0, 0, 1, 1], [], []>} : vector<128x3xf32>, vector<3x8xf32>, vector<128x8xf32> -> vector<128x8xf32>
    %4 = tpu.transpose %3, [1, 0] : vector<128x8xf32> -> vector<8x128xf32>
    %5 = vector.broadcast %2 : vector<8x1xf32> to vector<8x128xf32>
    %6 = arith.addf %4, %5 : vector<8x128xf32>
    %cst_3 = arith.constant 0.000000e+00 : f32
    %7 = vector.broadcast %cst_3 : f32 to vector<8x128xf32>
    %8 = arith.maximumf %6, %7 : vector<8x128xf32>
    %c8_4 = arith.constant 8 : index
    %c0_5 = arith.constant 0 : index
    %9 = vector.load %arg1[%c8_4, %c0_5] : memref<32x128xf32, #tpu.memory_space<vmem>>, vector<8x8xf32>
    %c8_6 = arith.constant 8 : index
    %c8_7 = arith.constant 8 : index
    %10 = vector.load %arg1[%c8_6, %c8_7] : memref<32x128xf32, #tpu.memory_space<vmem>>, vector<8x1xf32>
    %cst_8 = arith.constant dense<0.000000e+00> : vector<8x128xf32>
    %11 = tpu.matmul %9, %8, %cst_8 {dimension_numbers = #tpu.dot_dimension_numbers<[1], [0], [0], [1], [0, 0, 1, 1], [], []>} : vector<8x8xf32>, vector<8x128xf32>, vector<8x128xf32> -> vector<8x128xf32>
    %12 = vector.broadcast %10 : vector<8x1xf32> to vector<8x128xf32>
    %13 = arith.addf %11, %12 : vector<8x128xf32>
    %cst_9 = arith.constant 0.000000e+00 : f32
    %14 = vector.broadcast %cst_9 : f32 to vector<8x128xf32>
    %15 = arith.maximumf %13, %14 : vector<8x128xf32>
    %c16 = arith.constant 16 : index
    %c0_10 = arith.constant 0 : index
    %16 = vector.load %arg1[%c16, %c0_10] : memref<32x128xf32, #tpu.memory_space<vmem>>, vector<8x8xf32>
    %c16_11 = arith.constant 16 : index
    %c8_12 = arith.constant 8 : index
    %17 = vector.load %arg1[%c16_11, %c8_12] : memref<32x128xf32, #tpu.memory_space<vmem>>, vector<8x1xf32>
    %cst_13 = arith.constant dense<0.000000e+00> : vector<8x128xf32>
    %18 = tpu.matmul %16, %15, %cst_13 {dimension_numbers = #tpu.dot_dimension_numbers<[1], [0], [0], [1], [0, 0, 1, 1], [], []>} : vector<8x8xf32>, vector<8x128xf32>, vector<8x128xf32> -> vector<8x128xf32>
    %19 = vector.broadcast %17 : vector<8x1xf32> to vector<8x128xf32>
    %20 = arith.addf %18, %19 : vector<8x128xf32>
    %cst_14 = arith.constant 0.000000e+00 : f32
    %21 = vector.broadcast %cst_14 : f32 to vector<8x128xf32>
    %22 = arith.maximumf %20, %21 : vector<8x128xf32>
    %c24 = arith.constant 24 : index
    %c0_15 = arith.constant 0 : index
    %23 = vector.load %arg1[%c24, %c0_15] : memref<32x128xf32, #tpu.memory_space<vmem>>, vector<8x8xf32>
    %c24_16 = arith.constant 24 : index
    %c8_17 = arith.constant 8 : index
    %24 = vector.load %arg1[%c24_16, %c8_17] : memref<32x128xf32, #tpu.memory_space<vmem>>, vector<8x1xf32>
    %cst_18 = arith.constant dense<0.000000e+00> : vector<8x128xf32>
    %25 = tpu.matmul %23, %22, %cst_18 {dimension_numbers = #tpu.dot_dimension_numbers<[1], [0], [0], [1], [0, 0, 1, 1], [], []>} : vector<8x8xf32>, vector<8x128xf32>, vector<8x128xf32> -> vector<8x128xf32>
    %26 = vector.broadcast %24 : vector<8x1xf32> to vector<8x128xf32>
    %27 = arith.addf %25, %26 : vector<8x128xf32>
    %cst_19 = arith.constant 0.000000e+00 : f32
    %28 = vector.broadcast %cst_19 : f32 to vector<8x128xf32>
    %29 = arith.maximumf %27, %28 : vector<8x128xf32>
    %c24_20 = arith.constant 24 : index
    %c16_21 = arith.constant 16 : index
    %30 = vector.load %arg1[%c24_20, %c16_21] : memref<32x128xf32, #tpu.memory_space<vmem>>, vector<8x8xf32>
    %c24_22 = arith.constant 24 : index
    %c24_23 = arith.constant 24 : index
    %31 = vector.load %arg1[%c24_22, %c24_23] : memref<32x128xf32, #tpu.memory_space<vmem>>, vector<8x1xf32>
    %cst_24 = arith.constant dense<0.000000e+00> : vector<8x128xf32>
    %32 = tpu.matmul %30, %29, %cst_24 {dimension_numbers = #tpu.dot_dimension_numbers<[1], [0], [0], [1], [0, 0, 1, 1], [], []>} : vector<8x8xf32>, vector<8x128xf32>, vector<8x128xf32> -> vector<8x128xf32>
    %33 = vector.broadcast %31 : vector<8x1xf32> to vector<8x128xf32>
    %34 = arith.addf %32, %33 : vector<8x128xf32>
    %c0_25 = arith.constant 0 : index
    %c0_26 = arith.constant 0 : index
    %35 = vector.load %arg3[%c0_25, %c0_26] : memref<8x128xf32, #tpu.memory_space<vmem>>, vector<8x128xf32>
    tpu.vector_store %arg3[%c0_25, %c0_26], %34 {strides = array<i32>} : memref<8x128xf32, #tpu.memory_space<vmem>>, vector<8x128xf32>,
    return
  }
  func.func @transform_0(%arg0: i32) -> (i32, i32) {
    %c0_i32 = arith.constant 0 : i32
    %c0_i32_0 = arith.constant 0 : i32
    %c0_i32_1 = arith.constant 0 : i32
    return %c0_i32, %c0_i32_0 : i32, i32
  }
  func.func @transform_1(%arg0: i32) -> (i32, i32) {
    %c0_i32 = arith.constant 0 : i32
    %c0_i32_0 = arith.constant 0 : i32
    return %arg0, %c0_i32 : i32, i32
  }
  func.func @transform_2(%arg0: i32) -> (i32, i32) {
    %c0_i32 = arith.constant 0 : i32
    %c0_i32_0 = arith.constant 0 : i32
    return %c0_i32, %arg0 : i32, i32
  }
}

</mosaic_0001>

<bundles_post_ra>
// kernel: tpu_custom_call.1
= control target key start
LH: loop header
LB: loop body
LE: loop exit
PB: predicated region body
PF: predicated region fallthrough
CT: control target
= control target key end

     0   :  { %s487_s0 = inlined_call_operand.vmem [shape: f32[32,128], index: 0, kind: input, shape index: {}]   ;;  %s488_s1 = inlined_call_operand.vmem [shape: f32[128,3], index: 1, kind: input, shape index: {}]   ;;  %s489_s2 = inlined_call_operand.hbm [shape: f32[8,128], index: 2, kind: output, shape index: {}]  }
   0x1   :  { %v28_v0 = vld [vmem:[%s487_s0] sm:$0x7] }
   0x2   :  { %7 = vsyncpa [#allocation3], 0  ;;  %s381_s11 = smov 96   ;;  %vm82_vm0 = vcmask 1042432   ;;  %v12_v2 = vld [vmem:[%s488_s1] sm:$0xff]  ;;  %vm33_vm1 = vcmask 23552  }
   0x3   :  { %31 = vrot.lane.b32.xlu0 %v28_v0, %s381_s11  ;;  %v17_v3 = vld [vmem:[%s488_s1 + $0x28] sm:$0xff]  ;;  %v20_v4 = vld [vmem:[%s488_s1 + $0x40] sm:$0xff]  ;;  %v18_v7 = vld [vmem:[%s488_s1 + $0x30] sm:$0xff]  ;;  %v382_v22 = vmov 8   ;;  %vm195_vm2 = vcmask 64512   ;;  %s383_s23 = smov 112  }
   0x4   :  { %v24_v5 = vld [vmem:[%s488_s1 + $0x60] sm:$0xff]  ;;  %v13_v6 = vld [vmem:[%s488_s1 + $0x8] sm:$0xff]  ;;  %v14_v10 = vld [vmem:[%s488_s1 + $0x10] sm:$0xff]  ;;  %351 = vset.pattern.permute.xlu0 %v382_v22  ;;  %352 = vset.pattern.permute.xlu2 %v382_v22  ;;  %v384_v51 = vmov 24   ;;  %s313_s27 = sshll.u32 %s489_s2, 4  ;;  %s314_s27 = int_to_ptr.hbm [resolvable:$true] %s313_s27 }
   0x5   :  { %v21_v8 = vld [vmem:[%s488_s1 + $0x48] sm:$0xff]  ;;  %v19_v11 = vld [vmem:[%s488_s1 + $0x38] sm:$0xff]  ;;  %v22_v12 = vld [vmem:[%s488_s1 + $0x50] sm:$0xff] }
   0x6   :  { %v25_v9 = vld [vmem:[%s488_s1 + $0x68] sm:$0xff]  ;;  %v26_v13 = vld [vmem:[%s488_s1 + $0x70] sm:$0xff]  ;;  %v15_v14 = vld [vmem:[%s488_s1 + $0x18] sm:$0xff] }
   0x7   :  { %v23_v15 = vld [vmem:[%s488_s1 + $0x58] sm:$0xff]  ;;  %v16_v17 = vld [vmem:[%s488_s1 + $0x20] sm:$0xff]  ;;  %v189_v36 = vld [vmem:[%s487_s0 + $0x8] sm:$0xff] }
   0x8   :  { %v27_v16 = vld [vmem:[%s488_s1 + $0x78] sm:$0xff]  ;;  %v29_v21 = vld [vmem:[%s487_s0] sm:$0xff]  ;;  %192 = vperm.xlu2 %352, %v189_v36   ;;  %v219_v37 = vld [vmem:[%s487_s0 + $0x10] sm:$0xff] }
   0x9   :  { %v248_v38 = vld [vmem:[%s487_s0 + $0x18] sm:$0xff]  ;;  %s385_s0 = smov [#allocation2]  }
   0xa   :  { %s311_s24 = sshll.u32 %s385_s0, 4  ;;  %s312_s24 = int_to_ptr.vmem [resolvable:$true] %s311_s24 }
   0xb   :  { %184 = vperm.xlu0 %351, %v29_v21  }
  0x10   :  { %222 = vperm.xlu2 %352, %v219_v37  }
  0x13   :  { %281 = vrot.lane.b32.xlu0 %v248_v38, %s383_s23 }
  0x14   :  { %354 = vset.pattern.permute.xlu0 %v384_v51 }
  0x18   :  { %251 = vperm.xlu2 %352, %v248_v38  }
  0x20   :  { %353 = vset.pattern.permute.xlu2 %v384_v51 }
  0x21   :  { %278 = vperm.xlu2 %353, %v248_v38  }
  0x62   :  { %v193_v43 = vpop.permute.xlu2 %192 }
  0x6a   :  { %v223_v47 = vpop.permute.xlu2 %222 }
  0x72   :  { %v252_v52 = vpop.permute.xlu2 %251 }
  0x75   :  { %v32_v1 = vpop.permute.xlu0 %31 }
  0x76   :  { %322 = vmatpush.msk.msra.mxu0 %vm82_vm0, %v32_v1  ;;  %343 = vmatpush.msk.msra.mxu1 %vm82_vm0, %v32_v1 }
  0x77   :  { %344 = vmatpush.msk.msra.mxu2 %vm82_vm0, %v32_v1  ;;  %345 = vmatpush.msk.msra.mxu3 %vm82_vm0, %v32_v1 }
  0x78   :  { %323 = vmatmul.msk.f32.vlgmr.msra.gmra.mxu0 %vm33_vm1, %v12_v2  ;;  %328 = vmatmul.msk.f32.vlgmr.msra.gmra.mxu1 %vm33_vm1, %v17_v3 }
  0x79   :  { %331 = vmatmul.msk.f32.vlgmr.msra.gmra.mxu2 %vm33_vm1, %v20_v4  ;;  %335 = vmatmul.msk.f32.vlgmr.msra.gmra.mxu3 %vm33_vm1, %v24_v5 }
  0x7b   :  { %v279_v57 = vpop.permute.xlu2 %278 }
  0x7d   :  { %v185_v39 = vpop.permute.xlu0 %184 }
  0x80   :  { %324 = vmatmul.msk.f32.gmra.mxu0 %vm33_vm1, %v13_v6  ;;  %329 = vmatmul.msk.f32.gmra.mxu1 %vm33_vm1, %v18_v7 }
  0x81   :  { %332 = vmatmul.msk.f32.gmra.mxu2 %vm33_vm1, %v21_v8  ;;  %336 = vmatmul.msk.f32.gmra.mxu3 %vm33_vm1, %v25_v9 }
  0x85   :  { %v282_v56 = vpop.permute.xlu0 %281 }
  0x88   :  { %325 = vmatmul.msk.f32.gmra.mxu0 %vm33_vm1, %v14_v10  ;;  %330 = vmatmul.msk.f32.gmra.mxu1 %vm33_vm1, %v19_v11 }
  0x89   :  { %333 = vmatmul.msk.f32.gmra.mxu2 %vm33_vm1, %v22_v12  ;;  %337 = vmatmul.msk.f32.gmra.mxu3 %vm33_vm1, %v26_v13 }
  0x90   :  { %326 = vmatmul.msk.f32.gmra.mxu0 %vm33_vm1, %v15_v14 }
  0x91   :  { %334 = vmatmul.msk.f32.gmra.mxu2 %vm33_vm1, %v23_v15  ;;  %338 = vmatmul.msk.f32.gmra.mxu3 %vm33_vm1, %v27_v16 }
  0x98   :  { %327 = vmatmul.msk.f32.gmra.mxu0 %vm33_vm1, %v16_v17 }
  0xf5   :  { %v102_v18 = vpop.f32.mrf.mxu0  ;;  %v117_v25 = vpop.f32.mrf.mxu1 }
  0xf6   :  { %150 = vxpose.xlu1.b32.start [1/16] (narrow) %v102_v18, 8 }
  0xfc   :  { %v126_v28 = vpop.f32.mrf.mxu2  ;;  %v138_v32 = vpop.f32.mrf.mxu3 }
  0xfd   :  { %v105_v19 = vpop.f32.mrf.mxu0  ;;  %v120_v26 = vpop.f32.mrf.mxu1 }
  0xfe   :  { %151 = vxpose.xlu1.b32.cont [2/16] (narrow) %v105_v19, 8 }
 0x104   :  { %v129_v29 = vpop.f32.mrf.mxu2  ;;  %v141_v33 = vpop.f32.mrf.mxu3 }
 0x105   :  { %v108_v20 = vpop.f32.mrf.mxu0  ;;  %v123_v27 = vpop.f32.mrf.mxu1 }
 0x106   :  { %152 = vxpose.xlu1.b32.cont [3/16] (narrow) %v108_v20, 8 }
 0x10c   :  { %v132_v30 = vpop.f32.mrf.mxu2  ;;  %v144_v34 = vpop.f32.mrf.mxu3 }
 0x10d   :  { %v111_v23 = vpop.f32.mrf.mxu0 }
 0x10e   :  { %153 = vxpose.xlu1.b32.cont [4/16] (narrow) %v111_v23, 8 }
 0x114   :  { %v135_v31 = vpop.f32.mrf.mxu2  ;;  %v147_v35 = vpop.f32.mrf.mxu3 }
 0x115   :  { %v114_v24 = vpop.f32.mrf.mxu0 }
 0x116   :  { %154 = vxpose.xlu1.b32.cont [5/16] (narrow) %v114_v24, 8 }
 0x11e   :  { %155 = vxpose.xlu1.b32.cont [6/16] (narrow) %v117_v25, 8 }
 0x126   :  { %156 = vxpose.xlu1.b32.cont [7/16] (narrow) %v120_v26, 8 }
 0x12e   :  { %157 = vxpose.xlu1.b32.cont [8/16] (narrow) %v123_v27, 8 }
 0x136   :  { %158 = vxpose.xlu1.b32.cont [9/16] (narrow) %v126_v28, 8 }
 0x13e   :  { %159 = vxpose.xlu1.b32.cont [10/16] (narrow) %v129_v29, 8 }
 0x146   :  { %160 = vxpose.xlu1.b32.cont [11/16] (narrow) %v132_v30, 8 }
 0x14e   :  { %161 = vxpose.xlu1.b32.cont [12/16] (narrow) %v135_v31, 8 }
 0x156   :  { %162 = vxpose.xlu1.b32.cont [13/16] (narrow) %v138_v32, 8 }
 0x15e   :  { %163 = vxpose.xlu1.b32.cont [14/16] (narrow) %v141_v33, 8 }
 0x166   :  { %164 = vxpose.xlu1.b32.cont [15/16] (narrow) %v144_v34, 8 }
 0x16e   :  { %165 = vxpose.xlu1.b32.end [16/16] (narrow) %v147_v35, 8 }
 0x19a   :  { %v166_v40 = vpop.trf.xlu1 }
 0x19b   :  { %v187_v41 = vadd.f32 %v185_v39, %v166_v40 }
 0x19d   :  { %v188_v42 = vmax.f32 %v187_v41, 0.0 }
 0x19f   :  { %213 = vmatpush.msrb.mxu1 %v188_v42 }
 0x1a0   :  { %339 = vmatmul.msk.f32.vlgmr.msrb.gmra.mxu1 %vm195_vm2, %v189_v36 }
 0x21d   :  { %v215_v44 = vpop.f32.mrf.mxu1 }
 0x21e   :  { %v216_v45 = vadd.f32 %v215_v44, %v193_v43 }
 0x220   :  { %v218_v46 = vmax.f32 %v216_v45, 0.0 }
 0x222   :  { %242 = vmatpush.msrb.mxu2 %v218_v46 }
 0x223   :  { %340 = vmatmul.msk.f32.vlgmr.msrb.gmra.mxu2 %vm195_vm2, %v219_v37 }
 0x2a6   :  { %v244_v48 = vpop.f32.mrf.mxu2 }
 0x2a7   :  { %v245_v49 = vadd.f32 %v244_v48, %v223_v47 }
 0x2a9   :  { %v247_v50 = vmax.f32 %v245_v49, 0.0 }
 0x2ab   :  { %271 = vmatpush.msrb.mxu3 %v247_v50 }
 0x2ac   :  { %341 = vmatmul.msk.f32.vlgmr.msrb.gmra.mxu3 %vm195_vm2, %v248_v38 }
 0x32f   :  { %v273_v53 = vpop.f32.mrf.mxu3 }
 0x330   :  { %v274_v54 = vadd.f32 %v273_v53, %v252_v52 }
 0x332   :  { %v276_v55 = vmax.f32 %v274_v54, 0.0 }
 0x334   :  { %300 = vmatpush.msra.mxu1 %v276_v55 }
 0x335   :  { %342 = vmatmul.msk.f32.vlgmr.msra.gmra.mxu1 %vm195_vm2, %v282_v56 }
 0x3b2   :  { %v302_v58 = vpop.f32.mrf.mxu1 }
 0x3b3   :  { %v303_v59 = vadd.f32 %v302_v58, %v279_v57 }
 0x3b5   :  { %305 = vst [vmem:[#allocation2] sm:$0xff] %v303_v59 }
 0x3b6   :  { %316 = dma.vmem_to_hbm [thread:$0]  %s312_s24, 128, %s314_s27, [#allocation3]  }
 0x3b7   :  { %379 = dma.done.wait [#allocation3], 128  }
 0x3b8   :  { %380 = vsyncadd [#allocation3], 4294967168 }
 0x3b9   :  { %321 = vsyncpa [#allocation3], 1 }

</bundles_post_ra>
